<compile_context>
chip_gen: v7x
topology: tpu7x:2x2x1
jax: 0.10.0
libtpu: 0.0.40
codegen_flags: <defaults>
</compile_context>

<pallas_src>
import functools

import jax
import jax.numpy as jnp
from jax.experimental import pallas as pl
from jax.experimental.pallas import tpu as pltpu


def _ensemble_kernel(x_ref, w_ref, b_ref, o_ref, *, num_models, nc_pad):
    # Single MXU matmul with the ensemble axis folded into N:
    #   (B_pad, D) @ (D, M*NC_pad) -> (B_pad, M*NC_pad), f32 accumulation.
    logits = jnp.dot(x_ref[...], w_ref[...], preferred_element_type=jnp.float32)
    logits = logits + b_ref[...]  # per-model bias, broadcast f32 VPU add

    # Mean over models: each model owns one lane-aligned, 128-wide chunk.
    acc = logits[:, 0:nc_pad]
    for m in range(1, num_models):
        acc = acc + logits[:, m * nc_pad:(m + 1) * nc_pad]
    o_ref[...] = acc * (1.0 / num_models)


def bird_ensemble_forward(x, weights, biases):
    """x: (B, C, H, W) f32; weights: (M, D, NC) f32; biases: (M, 1, NC) f32."""
    B = x.shape[0]
    M, D, NC = weights.shape
    x_flat = x.reshape(B, D)  # row-major NCHW flatten == torch.flatten(x, 1)

    # Lane/sublane-dense kernel-facing layout.
    B_pad = max(8, -(-B // 8) * 8)          # sublane multiple
    NC_pad = -(-NC // 128) * 128            # lane multiple (per-model chunk)

    # x: pad batch rows with zeros, cast to bf16 for the MXU.
    x_p = jnp.zeros((B_pad, D), jnp.float32).at[:B, :].set(x_flat)
    x_p = x_p.astype(jnp.bfloat16)

    # weights: (M, D, NC) -> zero-pad NC -> (D, M, NC_pad) -> (D, M*NC_pad), bf16.
    w_p = jnp.zeros((M, D, NC_pad), jnp.float32).at[:, :, :NC].set(weights)
    w_p = w_p.transpose(1, 0, 2).reshape(D, M * NC_pad).astype(jnp.bfloat16)

    # biases: (M, 1, NC) -> (1, M*NC_pad), kept f32 (added post-matmul on VPU).
    b_p = jnp.zeros((M, NC_pad), jnp.float32).at[:, :NC].set(biases[:, 0, :])
    b_p = b_p.reshape(1, M * NC_pad)

    kernel = functools.partial(_ensemble_kernel, num_models=M, nc_pad=NC_pad)

    out_padded = pl.pallas_call(
        kernel,
        out_shape=jax.ShapeDtypeStruct((B_pad, NC_pad), jnp.float32),
        grid_spec=pltpu.PrefetchScalarGridSpec(
            num_scalar_prefetch=0,
            grid=(1,),  # everything fits comfortably in VMEM -> single step
            in_specs=[
                pl.BlockSpec((B_pad, D), lambda i: (0, 0)),          # activations
                pl.BlockSpec((D, M * NC_pad), lambda i: (0, 0)),     # folded weights
                pl.BlockSpec((1, M * NC_pad), lambda i: (0, 0)),     # folded biases
            ],
            out_specs=pl.BlockSpec((B_pad, NC_pad), lambda i: (0, 0)),
        ),
        compiler_params=pltpu.CompilerParams(
            dimension_semantics=("arbitrary",)),
    )(x_p, w_p, b_p)

    return out_padded[:B, :NC]


def _reference(x, weights, biases):
    """Pure-JAX f32 reference of the PyTorch forward (stack then mean over models)."""
    B = x.shape[0]
    M, D, NC = weights.shape
    x_flat = x.reshape(B, D)
    outs = jnp.stack(
        [x_flat @ weights[m] + biases[m, 0] for m in range(M)], axis=0
    )  # (M, B, NC)
    return jnp.mean(outs, axis=0)


def _reference_bf16_inputs(x, weights, biases):
    """Same math with inputs rounded to bf16 (matches the kernel's MXU input dtype)."""
    xb = x.astype(jnp.bfloat16).astype(jnp.float32)
    wb = weights.astype(jnp.bfloat16).astype(jnp.float32)
    return _reference(xb, wb, biases)


if __name__ == "__main__":
    # Small, deterministic shapes consistent with the module's forward.
    B, C, H, W = 2, 4, 16, 16
    NUM_MODELS = 3
    NUM_CLASSES = 10
    D = C * H * W

    key = jax.random.PRNGKey(0)
    kx, kw, kb = jax.random.split(key, 3)

    x = jax.random.normal(kx, (B, C, H, W), dtype=jnp.float32)
    # TODO(synk): the PyTorch ensemble members are arbitrary nn.Modules (pretrained
    # CNNs); they are represented here as deterministic synthetic linear classifiers.
    weights = jax.random.normal(kw, (NUM_MODELS, D, NUM_CLASSES), dtype=jnp.float32) * 0.02
    biases = jax.random.normal(kb, (NUM_MODELS, 1, NUM_CLASSES), dtype=jnp.float32) * 0.1

    out = jax.jit(bird_ensemble_forward)(x, weights, biases)
    out = jax.block_until_ready(out)

    ref_f32 = _reference(x, weights, biases)
    ref_bf16 = _reference_bf16_inputs(x, weights, biases)

    assert out.shape == (B, NUM_CLASSES), out.shape
    # Tight check vs. a bf16-input reference (same rounding as the kernel's MXU inputs).
    assert jnp.allclose(out, ref_bf16, atol=1e-3, rtol=1e-3), (
        f"max abs err vs bf16 ref {jnp.max(jnp.abs(out - ref_bf16))}"
    )
    # Loose check vs. the full-f32 PyTorch-equivalent reference (bf16 input rounding).
    assert jnp.allclose(out, ref_f32, atol=5e-2, rtol=5e-2), (
        f"max abs err vs f32 ref {jnp.max(jnp.abs(out - ref_f32))}"
    )
    print("KERNEL_OK")
</pallas_src>

<mosaic_0001>
module attributes {stable_mosaic.version = 11 : i64} {
  func.func @_ensemble_kernel(%arg0: i32, %arg1: memref<8x1024xbf16, #tpu.memory_space<vmem>>, %arg2: memref<1024x384xbf16, #tpu.memory_space<vmem>>, %arg3: memref<1x384xf32, #tpu.memory_space<vmem>>, %arg4: memref<8x128xf32, #tpu.memory_space<vmem>>) attributes {dimension_semantics = [#tpu.dimension_semantics<arbitrary>], iteration_bounds = array<i64: 1>, scalar_prefetch = 0 : i64, scratch_operands = 0 : i64, tpu.core_type = #tpu.core_type<tc>, window_params = [{pipeline_mode = #tpu.pipeline_mode<synchronous>, transform_indices = @transform_0, window_bounds = array<i64: 8, 1024>}, {pipeline_mode = #tpu.pipeline_mode<synchronous>, transform_indices = @transform_1, window_bounds = array<i64: 1024, 384>}, {pipeline_mode = #tpu.pipeline_mode<synchronous>, transform_indices = @transform_2, window_bounds = array<i64: 1, 384>}, {pipeline_mode = #tpu.pipeline_mode<synchronous>, transform_indices = @transform_3, window_bounds = array<i64: 8, 128>}]} {
    %c0 = arith.constant 0 : index
    %c0_0 = arith.constant 0 : index
    %0 = vector.load %arg1[%c0, %c0_0] : memref<8x1024xbf16, #tpu.memory_space<vmem>>, vector<8x1024xbf16>
    %c0_1 = arith.constant 0 : index
    %c0_2 = arith.constant 0 : index
    %1 = vector.load %arg2[%c0_1, %c0_2] : memref<1024x384xbf16, #tpu.memory_space<vmem>>, vector<1024x384xbf16>
    %cst = arith.constant dense<0.000000e+00> : vector<8x384xf32>
    %2 = tpu.matmul %0, %1, %cst {dimension_numbers = #tpu.dot_dimension_numbers<[1], [0], [0], [1], [0, 0, 1, 1], [], []>} : vector<8x1024xbf16>, vector<1024x384xbf16>, vector<8x384xf32> -> vector<8x384xf32>
    %c0_3 = arith.constant 0 : index
    %c0_4 = arith.constant 0 : index
    %3 = vector.load %arg3[%c0_3, %c0_4] : memref<1x384xf32, #tpu.memory_space<vmem>>, vector<1x384xf32>
    %4 = vector.broadcast %3 : vector<1x384xf32> to vector<8x384xf32>
    %5 = arith.addf %2, %4 : vector<8x384xf32>
    %6 = vector.extract_strided_slice %5 {offsets = [0, 0], sizes = [8, 128], strides = [1, 1]} : vector<8x384xf32> to vector<8x128xf32>
    %7 = vector.extract_strided_slice %5 {offsets = [0, 128], sizes = [8, 128], strides = [1, 1]} : vector<8x384xf32> to vector<8x128xf32>
    %8 = arith.addf %6, %7 : vector<8x128xf32>
    %9 = vector.extract_strided_slice %5 {offsets = [0, 256], sizes = [8, 128], strides = [1, 1]} : vector<8x384xf32> to vector<8x128xf32>
    %10 = arith.addf %8, %9 : vector<8x128xf32>
    %cst_5 = arith.constant 0.333333343 : f32
    %11 = vector.broadcast %cst_5 : f32 to vector<8x128xf32>
    %12 = arith.mulf %10, %11 : vector<8x128xf32>
    %c0_6 = arith.constant 0 : index
    %c0_7 = arith.constant 0 : index
    %13 = vector.load %arg4[%c0_6, %c0_7] : memref<8x128xf32, #tpu.memory_space<vmem>>, vector<8x128xf32>
    tpu.vector_store %arg4[%c0_6, %c0_7], %12 {strides = array<i32>} : memref<8x128xf32, #tpu.memory_space<vmem>>, vector<8x128xf32>,
    return
  }
  func.func @transform_0(%arg0: i32) -> (i32, i32) {
    %c0_i32 = arith.constant 0 : i32
    %c0_i32_0 = arith.constant 0 : i32
    %c0_i32_1 = arith.constant 0 : i32
    return %c0_i32, %c0_i32_0 : i32, i32
  }
  func.func @transform_1(%arg0: i32) -> (i32, i32) {
    %c0_i32 = arith.constant 0 : i32
    %c0_i32_0 = arith.constant 0 : i32
    %c0_i32_1 = arith.constant 0 : i32
    return %c0_i32, %c0_i32_0 : i32, i32
  }
  func.func @transform_2(%arg0: i32) -> (i32, i32) {
    %c0_i32 = arith.constant 0 : i32
    %c0_i32_0 = arith.constant 0 : i32
    %c0_i32_1 = arith.constant 0 : i32
    return %c0_i32, %c0_i32_0 : i32, i32
  }
  func.func @transform_3(%arg0: i32) -> (i32, i32) {
    %c0_i32 = arith.constant 0 : i32
    %c0_i32_0 = arith.constant 0 : i32
    %c0_i32_1 = arith.constant 0 : i32
    return %c0_i32, %c0_i32_0 : i32, i32
  }
}

</mosaic_0001>

<bundles_post_ra>
// kernel: bird_ensemble_forward.1
= control target key start
LH: loop header
LB: loop body
LE: loop exit
PB: predicated region body
PF: predicated region fallthrough
CT: control target
= control target key end

     0   :  { %s2890_s1 = inlined_call_operand.vmem [shape: bf16[1024,384], index: 1, kind: input, shape index: {}]   ;;  %s2891_s0 = inlined_call_operand.vmem [shape: bf16[8,1024], index: 0, kind: input, shape index: {}]   ;;  %s2892_s2 = inlined_call_operand.vmem [shape: f32[1,384], index: 2, kind: input, shape index: {}]   ;;  %s2893_s3 = inlined_call_operand.vmem [shape: f32[8,128], index: 3, kind: output, shape index: {}]  }
   0x1   :  { %v1976_v0 = vld [vmem:[%s2890_s1 + $0x4] ss:$12 sps:$4 sm:$0xff]   ;;  %v1980_v2 = vld [vmem:[%s2890_s1] ss:$12 sps:$4 sm:$0xff]   ;;  %v1982_v4 = vld [vmem:[%s2890_s1 + $0x1c] ss:$12 sps:$4 sm:$0xff]  }
   0x2   :  { %v1978_v1 = vld [vmem:[%s2890_s1 + $0x184] ss:$12 sps:$4 sm:$0xff]   ;;  %1344 = vmatprep.subr.bf16.mxu1 %v1976_v0  ;;  %v1981_v3 = vld [vmem:[%s2890_s1 + $0x180] ss:$12 sps:$4 sm:$0xff]   ;;  %v1984_v5 = vld [vmem:[%s2890_s1 + $0x19c] ss:$12 sps:$4 sm:$0xff]  }
   0x3   :  { %1385 = vmatprep.subr.bf16.mxu0 %v1978_v1  ;;  %1345 = vmatpush1.bf16.msra.mxu1 %v1980_v2  ;;  %v1986_v6 = vld [vmem:[%s2890_s1 + $0x18] ss:$12 sps:$4 sm:$0xff]   ;;  %v1988_v8 = vld [vmem:[%s2890_s1 + $0x34] ss:$12 sps:$4 sm:$0xff]   ;;  %v1992_v10 = vld [vmem:[%s2890_s1 + $0x30] ss:$12 sps:$4 sm:$0xff]  }
   0x4   :  { %1386 = vmatpush1.bf16.msra.mxu0 %v1981_v3  ;;  %1346 = vmatprep.subr.bf16.mxu1 %v1982_v4  ;;  %v1987_v7 = vld [vmem:[%s2890_s1 + $0x198] ss:$12 sps:$4 sm:$0xff]   ;;  %v1990_v9 = vld [vmem:[%s2890_s1 + $0x1b4] ss:$12 sps:$4 sm:$0xff]   ;;  %v1993_v11 = vld [vmem:[%s2890_s1 + $0x1b0] ss:$12 sps:$4 sm:$0xff]  }
   0x5   :  { %1387 = vmatprep.subr.bf16.mxu0 %v1984_v5  ;;  %v1994_v12 = vld [vmem:[%s2890_s1 + $0x4c] ss:$12 sps:$4 sm:$0xff]   ;;  %v1998_v14 = vld [vmem:[%s2890_s1 + $0x48] ss:$12 sps:$4 sm:$0xff]   ;;  %v2000_v16 = vld [vmem:[%s2890_s1 + $0x64] ss:$12 sps:$4 sm:$0xff]  }
   0x6   :  { %v1996_v13 = vld [vmem:[%s2890_s1 + $0x1cc] ss:$12 sps:$4 sm:$0xff]   ;;  %v1999_v15 = vld [vmem:[%s2890_s1 + $0x1c8] ss:$12 sps:$4 sm:$0xff]   ;;  %v2002_v17 = vld [vmem:[%s2890_s1 + $0x1e4] ss:$12 sps:$4 sm:$0xff]  }
   0x7   :  { %1347 = vmatpush1.bf16.msra.mxu1 %v1986_v6  ;;  %v2004_v18 = vld [vmem:[%s2890_s1 + $0x60] ss:$12 sps:$4 sm:$0xff]   ;;  %v2006_v20 = vld [vmem:[%s2890_s1 + $0x7c] ss:$12 sps:$4 sm:$0xff]   ;;  %v2010_v22 = vld [vmem:[%s2890_s1 + $0x78] ss:$12 sps:$4 sm:$0xff]  }
   0x8   :  { %1388 = vmatpush1.bf16.msra.mxu0 %v1987_v7  ;;  %1348 = vmatprep.subr.bf16.mxu1 %v1988_v8  ;;  %v2005_v19 = vld [vmem:[%s2890_s1 + $0x1e0] ss:$12 sps:$4 sm:$0xff]   ;;  %v2008_v21 = vld [vmem:[%s2890_s1 + $0x1fc] ss:$12 sps:$4 sm:$0xff]   ;;  %v2011_v23 = vld [vmem:[%s2890_s1 + $0x1f8] ss:$12 sps:$4 sm:$0xff]  }
   0x9   :  { %1389 = vmatprep.subr.bf16.mxu0 %v1990_v9  ;;  %v2012_v24 = vld [vmem:[%s2890_s1 + $0x94] ss:$12 sps:$4 sm:$0xff]   ;;  %v2016_v26 = vld [vmem:[%s2890_s1 + $0x90] ss:$12 sps:$4 sm:$0xff]   ;;  %v2018_v28 = vld [vmem:[%s2890_s1 + $0xac] ss:$12 sps:$4 sm:$0xff]  }
   0xa   :  { %v2014_v25 = vld [vmem:[%s2890_s1 + $0x214] ss:$12 sps:$4 sm:$0xff]   ;;  %v2017_v27 = vld [vmem:[%s2890_s1 + $0x210] ss:$12 sps:$4 sm:$0xff]   ;;  %v2020_v29 = vld [vmem:[%s2890_s1 + $0x22c] ss:$12 sps:$4 sm:$0xff]  }
   0xb   :  { %1349 = vmatpush1.bf16.msra.mxu1 %v1992_v10  ;;  %v2022_v30 = vld [vmem:[%s2890_s1 + $0xa8] ss:$12 sps:$4 sm:$0xff]   ;;  %v2024_v32 = vld [vmem:[%s2890_s1 + $0xc4] ss:$12 sps:$4 sm:$0xff]   ;;  %v2028_v34 = vld [vmem:[%s2890_s1 + $0xc0] ss:$12 sps:$4 sm:$0xff]  }
   0xc   :  { %1390 = vmatpush1.bf16.msra.mxu0 %v1993_v11  ;;  %1350 = vmatprep.subr.bf16.mxu1 %v1994_v12  ;;  %v2023_v31 = vld [vmem:[%s2890_s1 + $0x228] ss:$12 sps:$4 sm:$0xff]   ;;  %v2026_v33 = vld [vmem:[%s2890_s1 + $0x244] ss:$12 sps:$4 sm:$0xff]   ;;  %v2029_v35 = vld [vmem:[%s2890_s1 + $0x240] ss:$12 sps:$4 sm:$0xff]  }
   0xd   :  { %1391 = vmatprep.subr.bf16.mxu0 %v1996_v13  ;;  %v2030_v36 = vld [vmem:[%s2890_s1 + $0xdc] ss:$12 sps:$4 sm:$0xff]   ;;  %v2034_v38 = vld [vmem:[%s2890_s1 + $0xd8] ss:$12 sps:$4 sm:$0xff]   ;;  %v2036_v40 = vld [vmem:[%s2890_s1 + $0xf4] ss:$12 sps:$4 sm:$0xff]  }
   0xe   :  { %v2032_v37 = vld [vmem:[%s2890_s1 + $0x25c] ss:$12 sps:$4 sm:$0xff]   ;;  %v2035_v39 = vld [vmem:[%s2890_s1 + $0x258] ss:$12 sps:$4 sm:$0xff]   ;;  %v2038_v41 = vld [vmem:[%s2890_s1 + $0x274] ss:$12 sps:$4 sm:$0xff]  }
   0xf   :  { %1351 = vmatpush1.bf16.msra.mxu1 %v1998_v14  ;;  %v2040_v42 = vld [vmem:[%s2890_s1 + $0xf0] ss:$12 sps:$4 sm:$0xff]   ;;  %v2042_v44 = vld [vmem:[%s2890_s1 + $0x10c] ss:$12 sps:$4 sm:$0xff]   ;;  %v2046_v46 = vld [vmem:[%s2890_s1 + $0x108] ss:$12 sps:$4 sm:$0xff]  }
  0x10   :  { %1392 = vmatpush1.bf16.msra.mxu0 %v1999_v15  ;;  %1352 = vmatprep.subr.bf16.mxu1 %v2000_v16  ;;  %v2041_v43 = vld [vmem:[%s2890_s1 + $0x270] ss:$12 sps:$4 sm:$0xff]   ;;  %v2044_v45 = vld [vmem:[%s2890_s1 + $0x28c] ss:$12 sps:$4 sm:$0xff]   ;;  %v15_v47 = vld [vmem:[%s2891_s0] sm:$0xff] }
  0x11   :  { %1393 = vmatprep.subr.bf16.mxu0 %v2002_v17  ;;  %v2404_v48 = vcombine.high %v15_v47, %v15_v47  ;;  %v16_v49 = vld [vmem:[%s2891_s0 + $0x8] sm:$0xff]  ;;  %v2048_v51 = vld [vmem:[%s2890_s1 + $0x124] ss:$12 sps:$4 sm:$0xff]   ;;  %v2060_v60 = vld [vmem:[%s2890_s1 + $0x154] ss:$12 sps:$4 sm:$0xff]   ;;  %v2470_v6 = vcombine.low %v15_v47, %v15_v47 }
  0x12   :  { %v2047_v50 = vld [vmem:[%s2890_s1 + $0x288] ss:$12 sps:$4 sm:$0xff]   ;;  %v2415_v52 = vcombine.high %v16_v49, %v16_v49  ;;  %v2050_v53 = vld [vmem:[%s2890_s1 + $0x2a4] ss:$12 sps:$4 sm:$0xff]   ;;  %v2052_v54 = vld [vmem:[%s2890_s1 + $0x120] ss:$12 sps:$4 sm:$0xff]   ;;  %v2472_v7 = vcombine.low %v16_v49, %v16_v49 }
  0x13   :  { %1353 = vmatpush1.bf16.msra.mxu1 %v2004_v18  ;;  %1376 = vmatprep.mubr.bf16.mxu1 %v2404_v48  ;;  %v2053_v55 = vld [vmem:[%s2890_s1 + $0x2a0] ss:$12 sps:$4 sm:$0xff]   ;;  %v2054_v56 = vld [vmem:[%s2890_s1 + $0x13c] ss:$12 sps:$4 sm:$0xff]   ;;  %v2058_v58 = vld [vmem:[%s2890_s1 + $0x138] ss:$12 sps:$4 sm:$0xff]  }
  0x14   :  { %1394 = vmatpush1.bf16.msra.mxu0 %v2005_v19  ;;  %1354 = vmatprep.subr.bf16.mxu1 %v2006_v20  ;;  %v2056_v57 = vld [vmem:[%s2890_s1 + $0x2bc] ss:$12 sps:$4 sm:$0xff]   ;;  %v2059_v59 = vld [vmem:[%s2890_s1 + $0x2b8] ss:$12 sps:$4 sm:$0xff]   ;;  %v2062_v61 = vld [vmem:[%s2890_s1 + $0x2d4] ss:$12 sps:$4 sm:$0xff]  }
  0x15   :  { %1395 = vmatprep.subr.bf16.mxu0 %v2008_v21  ;;  %1417 = vmatprep.mubr.bf16.mxu0 %v2415_v52  ;;  %v2064_v62 = vld [vmem:[%s2890_s1 + $0x150] ss:$12 sps:$4 sm:$0xff]   ;;  %v2066_v0 = vld [vmem:[%s2890_s1 + $0x16c] ss:$12 sps:$4 sm:$0xff]   ;;  %v2070_v2 = vld [vmem:[%s2890_s1 + $0x168] ss:$12 sps:$4 sm:$0xff]  }
  0x16   :  { %v2065_v63 = vld [vmem:[%s2890_s1 + $0x2d0] ss:$12 sps:$4 sm:$0xff]   ;;  %v2068_v1 = vld [vmem:[%s2890_s1 + $0x2ec] ss:$12 sps:$4 sm:$0xff]   ;;  %v2071_v3 = vld [vmem:[%s2890_s1 + $0x2e8] ss:$12 sps:$4 sm:$0xff]  }
  0x17   :  { %1355 = vmatpush1.bf16.msra.mxu1 %v2010_v22  ;;  %v2078_v4 = vld [vmem:[%s2890_s1 + $0x304] ss:$12 sps:$4 sm:$0xff]   ;;  %v2079_v5 = vld [vmem:[%s2890_s1 + $0xc8] ss:$12 sps:$4 sm:$0xff]   ;;  %v2076_v8 = vld [vmem:[%s2890_s1 + $0x300] ss:$12 sps:$4 sm:$0xff]  }
  0x18   :  { %1396 = vmatpush1.bf16.msra.mxu0 %v2011_v23  ;;  %1356 = vmatprep.subr.bf16.mxu1 %v2012_v24  ;;  %v2080_v9 = vld [vmem:[%s2890_s1 + $0x8] ss:$12 sps:$4 sm:$0xff]   ;;  %v2084_v11 = vld [vmem:[%s2890_s1 + $0xe0] ss:$12 sps:$4 sm:$0xff]   ;;  %v2081_v12 = vld [vmem:[%s2890_s1 + $0x318] ss:$12 sps:$4 sm:$0xff]  }
  0x19   :  { %1397 = vmatprep.subr.bf16.mxu0 %v2014_v25  ;;  %v2083_v10 = vld [vmem:[%s2890_s1 + $0x31c] ss:$12 sps:$4 sm:$0xff]   ;;  %v2085_v13 = vld [vmem:[%s2890_s1 + $0x20] ss:$12 sps:$4 sm:$0xff]   ;;  %v2089_v15 = vld [vmem:[%s2890_s1 + $0xf8] ss:$12 sps:$4 sm:$0xff]  }
  0x1a   :  { %v2088_v14 = vld [vmem:[%s2890_s1 + $0x334] ss:$12 sps:$4 sm:$0xff]   ;;  %v2086_v16 = vld [vmem:[%s2890_s1 + $0x330] ss:$12 sps:$4 sm:$0xff]   ;;  %v2090_v17 = vld [vmem:[%s2890_s1 + $0x38] ss:$12 sps:$4 sm:$0xff]  }
  0x1b   :  { %1357 = vmatpush1.bf16.msra.mxu1 %v2016_v26  ;;  %v2093_v18 = vld [vmem:[%s2890_s1 + $0x34c] ss:$12 sps:$4 sm:$0xff]   ;;  %v2094_v19 = vld [vmem:[%s2890_s1 + $0x110] ss:$12 sps:$4 sm:$0xff]   ;;  %v2091_v20 = vld [vmem:[%s2890_s1 + $0x348] ss:$12 sps:$4 sm:$0xff]  }
  0x1c   :  { %1398 = vmatpush1.bf16.msra.mxu0 %v2017_v27  ;;  %1358 = vmatprep.subr.bf16.mxu1 %v2018_v28  ;;  %v2095_v21 = vld [vmem:[%s2890_s1 + $0x50] ss:$12 sps:$4 sm:$0xff]   ;;  %v2099_v23 = vld [vmem:[%s2890_s1 + $0x128] ss:$12 sps:$4 sm:$0xff]   ;;  %v2096_v24 = vld [vmem:[%s2890_s1 + $0x360] ss:$12 sps:$4 sm:$0xff]  }
  0x1d   :  { %1399 = vmatprep.subr.bf16.mxu0 %v2020_v29  ;;  %v2098_v22 = vld [vmem:[%s2890_s1 + $0x364] ss:$12 sps:$4 sm:$0xff]   ;;  %v2100_v25 = vld [vmem:[%s2890_s1 + $0x68] ss:$12 sps:$4 sm:$0xff]   ;;  %v2104_v27 = vld [vmem:[%s2890_s1 + $0x140] ss:$12 sps:$4 sm:$0xff]  }
  0x1e   :  { %v2103_v26 = vld [vmem:[%s2890_s1 + $0x37c] ss:$12 sps:$4 sm:$0xff]   ;;  %v2101_v28 = vld [vmem:[%s2890_s1 + $0x378] ss:$12 sps:$4 sm:$0xff]   ;;  %v2105_v29 = vld [vmem:[%s2890_s1 + $0x80] ss:$12 sps:$4 sm:$0xff]  }
  0x1f   :  { %1359 = vmatpush1.bf16.msra.mxu1 %v2022_v30  ;;  %v2108_v30 = vld [vmem:[%s2890_s1 + $0x394] ss:$12 sps:$4 sm:$0xff]   ;;  %v2129_v49 = vld [vmem:[%s2890_s1 + $0x278] ss:$12 sps:$4 sm:$0xff]  }
  0x20   :  { %1400 = vmatpush1.bf16.msra.mxu0 %v2023_v31  ;;  %1360 = vmatprep.subr.bf16.mxu1 %v2024_v32  ;;  %v2109_v31 = vld [vmem:[%s2890_s1 + $0x158] ss:$12 sps:$4 sm:$0xff]   ;;  %v2106_v32 = vld [vmem:[%s2890_s1 + $0x390] ss:$12 sps:$4 sm:$0xff]   ;;  %v2125_v47 = vld [vmem:[%s2890_s1 + $0x1a0] ss:$12 sps:$4 sm:$0xff]  }
  0x21   :  { %1401 = vmatprep.subr.bf16.mxu0 %v2026_v33  ;;  %v2110_v33 = vld [vmem:[%s2890_s1 + $0x98] ss:$12 sps:$4 sm:$0xff]  }
  0x23   :  { %1361 = vmatpush1.bf16.msra.mxu1 %v2028_v34  ;;  %v2113_v34 = vld [vmem:[%s2890_s1 + $0x3ac] ss:$12 sps:$4 sm:$0xff]  }
  0x24   :  { %1402 = vmatpush1.bf16.msra.mxu0 %v2029_v35  ;;  %1362 = vmatprep.subr.bf16.mxu1 %v2030_v36  ;;  %v2114_v35 = vld [vmem:[%s2890_s1 + $0x170] ss:$12 sps:$4 sm:$0xff]   ;;  %v2111_v36 = vld [vmem:[%s2890_s1 + $0x3a8] ss:$12 sps:$4 sm:$0xff]  }
  0x25   :  { %1403 = vmatprep.subr.bf16.mxu0 %v2032_v37  ;;  %v2115_v37 = vld [vmem:[%s2890_s1 + $0xb0] ss:$12 sps:$4 sm:$0xff]  }
  0x27   :  { %1363 = vmatpush1.bf16.msra.mxu1 %v2034_v38  ;;  %v2118_v38 = vld [vmem:[%s2890_s1 + $0x3c4] ss:$12 sps:$4 sm:$0xff]  }
  0x28   :  { %1404 = vmatpush1.bf16.msra.mxu0 %v2035_v39  ;;  %1364 = vmatprep.subr.bf16.mxu1 %v2036_v40  ;;  %v2119_v39 = vld [vmem:[%s2890_s1 + $0x248] ss:$12 sps:$4 sm:$0xff]   ;;  %v2116_v40 = vld [vmem:[%s2890_s1 + $0x3c0] ss:$12 sps:$4 sm:$0xff]  }
  0x29   :  { %1405 = vmatprep.subr.bf16.mxu0 %v2038_v41  ;;  %v2120_v41 = vld [vmem:[%s2890_s1 + $0x188] ss:$12 sps:$4 sm:$0xff]  }
  0x2b   :  { %1365 = vmatpush1.bf16.msra.mxu1 %v2040_v42  ;;  %v2123_v42 = vld [vmem:[%s2890_s1 + $0x3dc] ss:$12 sps:$4 sm:$0xff]  }
  0x2c   :  { %1406 = vmatpush1.bf16.msra.mxu0 %v2041_v43  ;;  %1366 = vmatprep.subr.bf16.mxu1 %v2042_v44  ;;  %v2585_v43 = vld [vmem:[%s2891_s0 + $0x10] sm:$0xff]  ;;  %v2124_v44 = vld [vmem:[%s2890_s1 + $0x260] ss:$12 sps:$4 sm:$0xff]  }
  0x2d   :  { %1407 = vmatprep.subr.bf16.mxu0 %v2044_v45  ;;  %v2592_v45 = vcombine.high %v2585_v43, %v2585_v43 }
  0x2f   :  { %1367 = vmatpush1.bf16.msra.mxu1 %v2046_v46  ;;  %v2121_v46 = vld [vmem:[%s2890_s1 + $0x3d8] ss:$12 sps:$4 sm:$0xff]  }
  0x30   :  { %1408 = vmatpush1.bf16.msra.mxu0 %v2047_v50  ;;  %1368 = vmatprep.subr.bf16.mxu1 %v2048_v51  ;;  %v2126_v50 = vld [vmem:[%s2890_s1 + $0x3f0] ss:$12 sps:$4 sm:$0xff]   ;;  %v2130_v51 = vld [vmem:[%s2890_s1 + $0x1b8] ss:$12 sps:$4 sm:$0xff]  }
  0x31   :  { %1409 = vmatprep.subr.bf16.mxu0 %v2050_v53  ;;  %v2133_v53 = vld [vmem:[%s2890_s1 + $0x40c] ss:$12 sps:$4 sm:$0xff]  }
  0x33   :  { %1369 = vmatpush1.bf16.msra.mxu1 %v2052_v54  ;;  %v2131_v54 = vld [vmem:[%s2890_s1 + $0x408] ss:$12 sps:$4 sm:$0xff]  }
  0x34   :  { %1410 = vmatpush1.bf16.msra.mxu0 %v2053_v55  ;;  %1370 = vmatprep.subr.bf16.mxu1 %v2054_v56  ;;  %v2135_v55 = vld [vmem:[%s2890_s1 + $0x1d0] ss:$12 sps:$4 sm:$0xff]  }
  0x35   :  { %1411 = vmatprep.subr.bf16.mxu0 %v2056_v57  ;;  %v2138_v56 = vld [vmem:[%s2890_s1 + $0x424] ss:$12 sps:$4 sm:$0xff]   ;;  %v2139_v57 = vld [vmem:[%s2890_s1 + $0x2a8] ss:$12 sps:$4 sm:$0xff]  }
  0x37   :  { %1371 = vmatpush1.bf16.msra.mxu1 %v2058_v58  ;;  %v2136_v58 = vld [vmem:[%s2890_s1 + $0x420] ss:$12 sps:$4 sm:$0xff]  }
  0x38   :  { %1412 = vmatpush1.bf16.msra.mxu0 %v2059_v59  ;;  %1372 = vmatprep.subr.bf16.mxu1 %v2060_v60  ;;  %v2140_v59 = vld [vmem:[%s2890_s1 + $0x1e8] ss:$12 sps:$4 sm:$0xff]  }
  0x39   :  { %1413 = vmatprep.subr.bf16.mxu0 %v2062_v61  ;;  %v2143_v60 = vld [vmem:[%s2890_s1 + $0x43c] ss:$12 sps:$4 sm:$0xff]   ;;  %v2144_v61 = vld [vmem:[%s2890_s1 + $0x2c0] ss:$12 sps:$4 sm:$0xff]  }
  0x3b   :  { %1373 = vmatpush1.bf16.msra.mxu1 %v2064_v62  ;;  %v2141_v62 = vld [vmem:[%s2890_s1 + $0x438] ss:$12 sps:$4 sm:$0xff]  }
  0x3c   :  { %1414 = vmatpush1.bf16.msra.mxu0 %v2065_v63  ;;  %1374 = vmatprep.subr.bf16.mxu1 %v2066_v0  ;;  %v2145_v63 = vld [vmem:[%s2890_s1 + $0x200] ss:$12 sps:$4 sm:$0xff]  }
  0x3d   :  { %1415 = vmatprep.subr.bf16.mxu0 %v2068_v1  ;;  %v2148_v0 = vld [vmem:[%s2890_s1 + $0x454] ss:$12 sps:$4 sm:$0xff]   ;;  %v2149_v1 = vld [vmem:[%s2890_s1 + $0x2d8] ss:$12 sps:$4 sm:$0xff]  }
  0x3f   :  { %1375 = vmatpush1.bf16.msra.mxu1 %v2070_v2  ;;  %v2146_v2 = vld [vmem:[%s2890_s1 + $0x450] ss:$12 sps:$4 sm:$0xff]  }
  0x40   :  { %1416 = vmatpush1.bf16.msra.mxu0 %v2071_v3  ;;  %1876 = vmatprep.subr.bf16.mxu1 %v2079_v5  ;;  %v2150_v3 = vld [vmem:[%s2890_s1 + $0x218] ss:$12 sps:$4 sm:$0xff]   ;;  %v2154_v5 = vld [vmem:[%s2890_s1 + $0x2f0] ss:$12 sps:$4 sm:$0xff]  }
  0x41   :  { %1426 = vmatprep.subr.bf16.mxu0 %v2078_v4  ;;  %v2153_v4 = vld [vmem:[%s2890_s1 + $0x46c] ss:$12 sps:$4 sm:$0xff]  }
  0x42   :  { %1377 = vmatmul.mubr.bf16.vlgmr.msra.gmra.mrb[0].mxu1 %v2470_v6 }
  0x43   :  { %1418 = vmatmul.mubr.bf16.vlgmr.msra.gmra.mrb[0].mxu0 %v2472_v7  ;;  %1877 = vmatpush3.bf16.msra.mxu1 %v2080_v9  ;;  %v2160_v9 = vld [vmem:[%s2890_s1 + $0x484] ss:$12 sps:$4 sm:$0xff]  }
  0x44   :  { %1427 = vmatpush1.bf16.msra.mxu0 %v2076_v8  ;;  %1878 = vmatprep.subr.bf16.mxu1 %v2084_v11  ;;  %v2155_v8 = vld [vmem:[%s2890_s1 + $0x230] ss:$12 sps:$4 sm:$0xff]   ;;  %v2158_v11 = vld [vmem:[%s2890_s1 + $0x480] ss:$12 sps:$4 sm:$0xff]  }
  0x45   :  { %1428 = vmatprep.subr.bf16.mxu0 %v2083_v10  ;;  %1540 = vmatprep.mubr.bf16.mxu1 %v2404_v48  ;;  %v2128_v48 = vld [vmem:[%s2890_s1 + $0x3f4] ss:$12 sps:$4 sm:$0xff]  }
  0x46   :  { %1458 = vmatprep.mubr.bf16.mxu0 %v2592_v45  ;;  %v2161_v10 = vld [vmem:[%s2890_s1 + $0x3c8] ss:$12 sps:$4 sm:$0xff]  }
  0x47   :  { %1879 = vmatpush3.bf16.msra.mxu1 %v2085_v13  ;;  %v2162_v13 = vld [vmem:[%s2890_s1 + $0x308] ss:$12 sps:$4 sm:$0xff]  }
  0x48   :  { %1429 = vmatpush1.bf16.msra.mxu0 %v2081_v12  ;;  %1880 = vmatprep.subr.bf16.mxu1 %v2089_v15  ;;  %v2686_v12 = vcombine.low %v2585_v43, %v2585_v43  ;;  %v2166_v15 = vld [vmem:[%s2890_s1 + $0x3e0] ss:$12 sps:$4 sm:$0xff]   ;;  %v2200_v43 = vld [vmem:[%s2890_s1 + $0x544] ss:$12 sps:$4 sm:$0xff]  }
  0x49   :  { %1430 = vmatprep.subr.bf16.mxu0 %v2088_v14  ;;  %v2165_v14 = vld [vmem:[%s2890_s1 + $0x49c] ss:$12 sps:$4 sm:$0xff]  }
  0x4b   :  { %1881 = vmatpush3.bf16.msra.mxu1 %v2090_v17  ;;  %v2167_v17 = vld [vmem:[%s2890_s1 + $0x320] ss:$12 sps:$4 sm:$0xff]  }
  0x4c   :  { %1431 = vmatpush1.bf16.msra.mxu0 %v2086_v16  ;;  %1882 = vmatprep.subr.bf16.mxu1 %v2094_v19  ;;  %v2163_v16 = vld [vmem:[%s2890_s1 + $0x498] ss:$12 sps:$4 sm:$0xff]   ;;  %v2168_v19 = vld [vmem:[%s2890_s1 + $0x4b0] ss:$12 sps:$4 sm:$0xff]  }
  0x4d   :  { %1432 = vmatprep.subr.bf16.mxu0 %v2093_v18  ;;  %v2170_v18 = vld [vmem:[%s2890_s1 + $0x4b4] ss:$12 sps:$4 sm:$0xff]  }
  0x4f   :  { %1883 = vmatpush3.bf16.msra.mxu1 %v2095_v21  ;;  %v2175_v21 = vld [vmem:[%s2890_s1 + $0x4cc] ss:$12 sps:$4 sm:$0xff]  }
  0x50   :  { %1433 = vmatpush1.bf16.msra.mxu0 %v2091_v20  ;;  %1884 = vmatprep.subr.bf16.mxu1 %v2099_v23  ;;  %v2172_v20 = vld [vmem:[%s2890_s1 + $0x338] ss:$12 sps:$4 sm:$0xff]   ;;  %v2173_v23 = vld [vmem:[%s2890_s1 + $0x4c8] ss:$12 sps:$4 sm:$0xff]  }
  0x51   :  { %1434 = vmatprep.subr.bf16.mxu0 %v2098_v22  ;;  %v2176_v22 = vld [vmem:[%s2890_s1 + $0x410] ss:$12 sps:$4 sm:$0xff]  }
  0x53   :  { %1885 = vmatpush3.bf16.msra.mxu1 %v2100_v25  ;;  %v2180_v25 = vld [vmem:[%s2890_s1 + $0x4e4] ss:$12 sps:$4 sm:$0xff]  }
  0x54   :  { %1435 = vmatpush1.bf16.msra.mxu0 %v2096_v24  ;;  %1886 = vmatprep.subr.bf16.mxu1 %v2104_v27  ;;  %v2177_v24 = vld [vmem:[%s2890_s1 + $0x350] ss:$12 sps:$4 sm:$0xff]   ;;  %v2178_v27 = vld [vmem:[%s2890_s1 + $0x4e0] ss:$12 sps:$4 sm:$0xff]  }
  0x55   :  { %1436 = vmatprep.subr.bf16.mxu0 %v2103_v26  ;;  %v2181_v26 = vld [vmem:[%s2890_s1 + $0x428] ss:$12 sps:$4 sm:$0xff]  }
  0x57   :  { %1887 = vmatpush3.bf16.msra.mxu1 %v2105_v29  ;;  %v2185_v29 = vld [vmem:[%s2890_s1 + $0x4fc] ss:$12 sps:$4 sm:$0xff]  }
  0x58   :  { %1437 = vmatpush1.bf16.msra.mxu0 %v2101_v28  ;;  %1888 = vmatprep.subr.bf16.mxu1 %v2109_v31  ;;  %v2182_v28 = vld [vmem:[%s2890_s1 + $0x368] ss:$12 sps:$4 sm:$0xff]   ;;  %v2183_v31 = vld [vmem:[%s2890_s1 + $0x4f8] ss:$12 sps:$4 sm:$0xff]  }
  0x59   :  { %1438 = vmatprep.subr.bf16.mxu0 %v2108_v30  ;;  %v2186_v30 = vld [vmem:[%s2890_s1 + $0x440] ss:$12 sps:$4 sm:$0xff]  }
  0x5b   :  { %1889 = vmatpush3.bf16.msra.mxu1 %v2110_v33  ;;  %v2190_v33 = vld [vmem:[%s2890_s1 + $0x514] ss:$12 sps:$4 sm:$0xff]  }
  0x5c   :  { %1439 = vmatpush1.bf16.msra.mxu0 %v2106_v32  ;;  %1890 = vmatprep.subr.bf16.mxu1 %v2114_v35  ;;  %v2187_v32 = vld [vmem:[%s2890_s1 + $0x380] ss:$12 sps:$4 sm:$0xff]   ;;  %v2763_v35 = vld [vmem:[%s2891_s0 + $0x18] sm:$0xff] }
  0x5d   :  { %1440 = vmatprep.subr.bf16.mxu0 %v2113_v34  ;;  %v2191_v34 = vld [vmem:[%s2890_s1 + $0x458] ss:$12 sps:$4 sm:$0xff]  }
  0x5f   :  { %1891 = vmatpush3.bf16.msra.mxu1 %v2115_v37  ;;  %v2188_v37 = vld [vmem:[%s2890_s1 + $0x510] ss:$12 sps:$4 sm:$0xff]  }
  0x60   :  { %1441 = vmatpush1.bf16.msra.mxu0 %v2111_v36  ;;  %1898 = vmatprep.subr.bf16.mxu1 %v2119_v39  ;;  %v1683_v36 = vcombine.high %v2763_v35, %v2763_v35  ;;  %v2195_v39 = vld [vmem:[%s2890_s1 + $0x52c] ss:$12 sps:$4 sm:$0xff]  }
  0x61   :  { %1442 = vmatprep.subr.bf16.mxu0 %v2118_v38  ;;  %v2192_v38 = vld [vmem:[%s2890_s1 + $0x398] ss:$12 sps:$4 sm:$0xff]  }
  0x62   :  { %1541 = vmatmul.mubr.bf16.vlgmr.msra.gmra.mrb[4].mxu1 %v2470_v6  ;;  %v2151_v6 = vld [vmem:[%s2890_s1 + $0x468] ss:$12 sps:$4 sm:$0xff]  }
  0x63   :  { %1899 = vmatpush3.bf16.msra.mxu1 %v2120_v41  ;;  %1580 = vmatprep.mubr.bf16.mxu1 %v2415_v52  ;;  %v2134_v52 = vld [vmem:[%s2890_s1 + $0x290] ss:$12 sps:$4 sm:$0xff]   ;;  %v2193_v41 = vld [vmem:[%s2890_s1 + $0x528] ss:$12 sps:$4 sm:$0xff]  }
  0x64   :  { %1443 = vmatpush1.bf16.msra.mxu0 %v2116_v40  ;;  %1900 = vmatprep.subr.bf16.mxu1 %v2124_v44  ;;  %v2196_v40 = vld [vmem:[%s2890_s1 + $0x470] ss:$12 sps:$4 sm:$0xff]   ;;  %v2201_v44 = vld [vmem:[%s2890_s1 + $0x548] ss:$12 sps:$4 sm:$0xff]  }
  0x65   :  { %1444 = vmatprep.subr.bf16.mxu0 %v2123_v42  ;;  %v2197_v42 = vld [vmem:[%s2890_s1 + $0x3b0] ss:$12 sps:$4 sm:$0xff]  }
  0x67   :  { %1901 = vmatpush3.bf16.msra.mxu1 %v2125_v47  ;;  %v2205_v47 = vld [vmem:[%s2890_s1 + $0x55c] ss:$12 sps:$4 sm:$0xff]  }
  0x68   :  { %1445 = vmatpush1.bf16.msra.mxu0 %v2121_v46  ;;  %1902 = vmatprep.subr.bf16.mxu1 %v2129_v49  ;;  %v2202_v46 = vld [vmem:[%s2890_s1 + $0x488] ss:$12 sps:$4 sm:$0xff]   ;;  %v2203_v49 = vld [vmem:[%s2890_s1 + $0x558] ss:$12 sps:$4 sm:$0xff]  }
  0x69   :  { %1446 = vmatprep.subr.bf16.mxu0 %v2128_v48  ;;  %v2206_v48 = vld [vmem:[%s2890_s1 + $0x560] ss:$12 sps:$4 sm:$0xff]  }
  0x6b   :  { %1903 = vmatpush3.bf16.msra.mxu1 %v2130_v51  ;;  %v2210_v51 = vld [vmem:[%s2890_s1 + $0x574] ss:$12 sps:$4 sm:$0xff]  }
  0x6c   :  { %1447 = vmatpush1.bf16.msra.mxu0 %v2126_v50  ;;  %1904 = vmatprep.subr.bf16.mxu1 %v2134_v52  ;;  %v2207_v50 = vld [vmem:[%s2890_s1 + $0x4a0] ss:$12 sps:$4 sm:$0xff]   ;;  %v2208_v52 = vld [vmem:[%s2890_s1 + $0x570] ss:$12 sps:$4 sm:$0xff]  }
  0x6d   :  { %1448 = vmatprep.subr.bf16.mxu0 %v2133_v53  ;;  %v2211_v53 = vld [vmem:[%s2890_s1 + $0x578] ss:$12 sps:$4 sm:$0xff]  }
  0x6f   :  { %1905 = vmatpush3.bf16.msra.mxu1 %v2135_v55  ;;  %v2215_v55 = vld [vmem:[%s2890_s1 + $0x58c] ss:$12 sps:$4 sm:$0xff]  }
  0x70   :  { %1449 = vmatpush1.bf16.msra.mxu0 %v2131_v54  ;;  %1906 = vmatprep.subr.bf16.mxu1 %v2139_v57  ;;  %v2212_v54 = vld [vmem:[%s2890_s1 + $0x4b8] ss:$12 sps:$4 sm:$0xff]   ;;  %v2213_v57 = vld [vmem:[%s2890_s1 + $0x588] ss:$12 sps:$4 sm:$0xff]  }
  0x71   :  { %1450 = vmatprep.subr.bf16.mxu0 %v2138_v56  ;;  %v2216_v56 = vld [vmem:[%s2890_s1 + $0x590] ss:$12 sps:$4 sm:$0xff]  }
  0x73   :  { %1907 = vmatpush3.bf16.msra.mxu1 %v2140_v59  ;;  %v2220_v59 = vld [vmem:[%s2890_s1 + $0x5a4] ss:$12 sps:$4 sm:$0xff]  }
  0x74   :  { %1451 = vmatpush1.bf16.msra.mxu0 %v2136_v58  ;;  %1908 = vmatprep.subr.bf16.mxu1 %v2144_v61  ;;  %v2217_v58 = vld [vmem:[%s2890_s1 + $0x4d0] ss:$12 sps:$4 sm:$0xff]   ;;  %v2218_v61 = vld [vmem:[%s2890_s1 + $0x5a0] ss:$12 sps:$4 sm:$0xff]  }
  0x75   :  { %1452 = vmatprep.subr.bf16.mxu0 %v2143_v60  ;;  %v2221_v60 = vld [vmem:[%s2890_s1 + $0x5a8] ss:$12 sps:$4 sm:$0xff]  }
  0x77   :  { %1909 = vmatpush3.bf16.msra.mxu1 %v2145_v63  ;;  %v2225_v63 = vld [vmem:[%s2890_s1 + $0x5bc] ss:$12 sps:$4 sm:$0xff]  }
  0x78   :  { %1453 = vmatpush1.bf16.msra.mxu0 %v2141_v62  ;;  %1910 = vmatprep.subr.bf16.mxu1 %v2149_v1  ;;  %v2222_v62 = vld [vmem:[%s2890_s1 + $0x4e8] ss:$12 sps:$4 sm:$0xff]   ;;  %v2223_v1 = vld [vmem:[%s2890_s1 + $0x5b8] ss:$12 sps:$4 sm:$0xff]  }
  0x79   :  { %1454 = vmatprep.subr.bf16.mxu0 %v2148_v0  ;;  %v2226_v0 = vld [vmem:[%s2890_s1 + $0x5c0] ss:$12 sps:$4 sm:$0xff]  }
  0x7b   :  { %1911 = vmatpush3.bf16.msra.mxu1 %v2150_v3  ;;  %v2230_v3 = vld [vmem:[%s2890_s1 + $0x5d4] ss:$12 sps:$4 sm:$0xff]  }
  0x7c   :  { %1455 = vmatpush1.bf16.msra.mxu0 %v2146_v2  ;;  %1912 = vmatprep.subr.bf16.mxu1 %v2154_v5  ;;  %v2227_v2 = vld [vmem:[%s2890_s1 + $0x500] ss:$12 sps:$4 sm:$0xff]   ;;  %v2228_v5 = vld [vmem:[%s2890_s1 + $0x5d0] ss:$12 sps:$4 sm:$0xff]  }
  0x7d   :  { %1456 = vmatprep.subr.bf16.mxu0 %v2153_v4  ;;  %v2231_v4 = vld [vmem:[%s2890_s1 + $0x5d8] ss:$12 sps:$4 sm:$0xff]  }
  0x7f   :  { %1913 = vmatpush3.bf16.msra.mxu1 %v2155_v8  ;;  %v2235_v8 = vld [vmem:[%s2890_s1 + $0x5ec] ss:$12 sps:$4 sm:$0xff]  }
  0x80   :  { %1457 = vmatpush1.bf16.msra.mxu0 %v2151_v6  ;;  %1920 = vmatprep.subr.bf16.mxu1 %v2161_v10  ;;  %v2232_v6 = vld [vmem:[%s2890_s1 + $0x518] ss:$12 sps:$4 sm:$0xff]   ;;  %v2233_v10 = vld [vmem:[%s2890_s1 + $0x5e8] ss:$12 sps:$4 sm:$0xff]  }
  0x81   :  { %1467 = vmatprep.subr.bf16.mxu0 %v2160_v9  ;;  %v2236_v9 = vld [vmem:[%s2890_s1 + $0x5f0] ss:$12 sps:$4 sm:$0xff]  }
  0x82   :  { %1581 = vmatmul.mubr.bf16.vlgmr.msra.gmra.mrb[8].mxu1 %v2472_v7  ;;  %v2171_v7 = vld [vmem:[%s2890_s1 + $0x3f8] ss:$12 sps:$4 sm:$0xff]  }
  0x83   :  { %1459 = vmatmul.mubr.bf16.vlgmr.msra.gmra.mrb[0].mxu0 %v2686_v12  ;;  %1921 = vmatpush3.bf16.msra.mxu1 %v2162_v13 }
  0x84   :  { %1468 = vmatpush1.bf16.msra.mxu0 %v2158_v11  ;;  %1922 = vmatprep.subr.bf16.mxu1 %v2166_v15  ;;  %v2237_v11 = vld [vmem:[%s2890_s1 + $0x530] ss:$12 sps:$4 sm:$0xff]  }
  0x85   :  { %1469 = vmatprep.subr.bf16.mxu0 %v2165_v14  ;;  %1620 = vmatprep.mubr.bf16.mxu1 %v2592_v45  ;;  %v2198_v45 = vld [vmem:[%s2890_s1 + $0x540] ss:$12 sps:$4 sm:$0xff]  }
  0x86   :  { %1499 = vmatprep.mubr.bf16.mxu0 %v1683_v36 }
  0x87   :  { %1923 = vmatpush3.bf16.msra.mxu1 %v2167_v17 }
  0x88   :  { %1470 = vmatpush1.bf16.msra.mxu0 %v2163_v16  ;;  %1924 = vmatprep.subr.bf16.mxu1 %v2171_v7 }
  0x89   :  { %1471 = vmatprep.subr.bf16.mxu0 %v2170_v18 }
  0x8b   :  { %1925 = vmatpush3.bf16.msra.mxu1 %v2172_v20 }
  0x8c   :  { %1472 = vmatpush1.bf16.msra.mxu0 %v2168_v19  ;;  %1926 = vmatprep.subr.bf16.mxu1 %v2176_v22 }
  0x8d   :  { %1473 = vmatprep.subr.bf16.mxu0 %v2175_v21  ;;  %v277_v21 = vlaneseq }
  0x8f   :  { %1927 = vmatpush3.bf16.msra.mxu1 %v2177_v24  ;;  %v278_v22 = vshrl.u32 %v277_v21, 7  ;;  %v275_v24 = vld [vmem:[%s2892_s2] sm:$0x7] }
  0x90   :  { %1474 = vmatpush1.bf16.msra.mxu0 %v2173_v23  ;;  %1928 = vmatprep.subr.bf16.mxu1 %v2181_v26 }
  0x91   :  { %1475 = vmatprep.subr.bf16.mxu0 %v2180_v25  ;;  %v287_v23 = vsub.s32 2, %v278_v22 }
  0x93   :  { %1929 = vmatpush3.bf16.msra.mxu1 %v2182_v28  ;;  %v288_v25 = vrot.slane %v275_v24, %v287_v23 }
  0x94   :  { %1476 = vmatpush1.bf16.msra.mxu0 %v2178_v27  ;;  %1930 = vmatprep.subr.bf16.mxu1 %v2186_v30 }
  0x95   :  { %1477 = vmatprep.subr.bf16.mxu0 %v2185_v29 }
  0x97   :  { %1931 = vmatpush3.bf16.msra.mxu1 %v2187_v32 }
  0x98   :  { %1478 = vmatpush1.bf16.msra.mxu0 %v2183_v31  ;;  %1932 = vmatprep.subr.bf16.mxu1 %v2191_v34 }
  0x99   :  { %1479 = vmatprep.subr.bf16.mxu0 %v2190_v33 }
  0x9b   :  { %1933 = vmatpush3.bf16.msra.mxu1 %v2192_v38 }
  0x9c   :  { %1480 = vmatpush1.bf16.msra.mxu0 %v2188_v37  ;;  %1934 = vmatprep.subr.bf16.mxu1 %v2196_v40  ;;  %v283_v40 = vsub.s32 1, %v278_v22 }
  0x9d   :  { %1481 = vmatprep.subr.bf16.mxu0 %v2195_v39  ;;  %v279_v39 = vsub.s32 0, %v278_v22 }
  0x9f   :  { %1935 = vmatpush3.bf16.msra.mxu1 %v2197_v42  ;;  %v284_v42 = vrot.slane %v275_v24, %v283_v40 }
  0xa0   :  { %1482 = vmatpush1.bf16.msra.mxu0 %v2193_v41  ;;  %1942 = vmatprep.subr.bf16.mxu1 %v2201_v44  ;;  %v280_v41 = vrot.slane %v275_v24, %v279_v39 }
  0xa1   :  { %1483 = vmatprep.subr.bf16.mxu0 %v2200_v43 }
  0xa2   :  { %1621 = vmatmul.mubr.bf16.vlgmr.msra.gmra.mrb[12].mxu1 %v2686_v12  ;;  %v1682_v12 = vcombine.low %v2763_v35, %v2763_v35 }
  0xa3   :  { %1943 = vmatpush3.bf16.msra.mxu1 %v2202_v46  ;;  %1660 = vmatprep.mubr.bf16.mxu1 %v1683_v36 }
  0xa4   :  { %1484 = vmatpush1.bf16.msra.mxu0 %v2198_v45  ;;  %1944 = vmatprep.subr.bf16.mxu1 %v2206_v48 }
  0xa5   :  { %1485 = vmatprep.subr.bf16.mxu0 %v2205_v47 }
  0xa7   :  { %1945 = vmatpush3.bf16.msra.mxu1 %v2207_v50 }
  0xa8   :  { %1486 = vmatpush1.bf16.msra.mxu0 %v2203_v49  ;;  %1946 = vmatprep.subr.bf16.mxu1 %v2211_v53 }
  0xa9   :  { %1487 = vmatprep.subr.bf16.mxu0 %v2210_v51 }
  0xab   :  { %1947 = vmatpush3.bf16.msra.mxu1 %v2212_v54 }
  0xac   :  { %1488 = vmatpush1.bf16.msra.mxu0 %v2208_v52  ;;  %1948 = vmatprep.subr.bf16.mxu1 %v2216_v56 }
  0xad   :  { %1489 = vmatprep.subr.bf16.mxu0 %v2215_v55 }
  0xaf   :  { %1949 = vmatpush3.bf16.msra.mxu1 %v2217_v58 }
  0xb0   :  { %1490 = vmatpush1.bf16.msra.mxu0 %v2213_v57  ;;  %1950 = vmatprep.subr.bf16.mxu1 %v2221_v60 }
  0xb1   :  { %1491 = vmatprep.subr.bf16.mxu0 %v2220_v59 }
  0xb3   :  { %1951 = vmatpush3.bf16.msra.mxu1 %v2222_v62 }
  0xb4   :  { %1492 = vmatpush1.bf16.msra.mxu0 %v2218_v61  ;;  %1952 = vmatprep.subr.bf16.mxu1 %v2226_v0 }
  0xb5   :  { %1493 = vmatprep.subr.bf16.mxu0 %v2225_v63 }
  0xb7   :  { %1953 = vmatpush3.bf16.msra.mxu1 %v2227_v2 }
  0xb8   :  { %1494 = vmatpush1.bf16.msra.mxu0 %v2223_v1  ;;  %1954 = vmatprep.subr.bf16.mxu1 %v2231_v4 }
  0xb9   :  { %1495 = vmatprep.subr.bf16.mxu0 %v2230_v3 }
  0xbb   :  { %1955 = vmatpush3.bf16.msra.mxu1 %v2232_v6 }
  0xbc   :  { %1496 = vmatpush1.bf16.msra.mxu0 %v2228_v5  ;;  %1956 = vmatprep.subr.bf16.mxu1 %v2236_v9 }
  0xbd   :  { %1497 = vmatprep.subr.bf16.mxu0 %v2235_v8 }
  0xbf   :  { %1957 = vmatpush3.bf16.msra.mxu1 %v2237_v11 }
  0xc0   :  { %1498 = vmatpush1.bf16.msra.mxu0 %v2233_v10 }
  0xc2   :  { %1661 = vmatmul.mubr.bf16.vlgmr.msra.gmra.mrb[16].mxu1 %v1682_v12 }
  0xc3   :  { %1500 = vmatmul.mubr.bf16.vlgmr.msra.gmra.mrb[0].mxu0 %v1682_v12 }
 0x115   :  { %v1378_v13 = vpop.f32.mrb[0].mxu1 }
 0x116   :  { %v1380_v14 = vpop.f32.mrb[1].mxu1  ;;  %v1379_v43 = vadd.f32 %v1378_v13, %v280_v41 }
 0x117   :  { %v1382_v15 = vpop.f32.mrb[2].mxu1  ;;  %v1381_v44 = vadd.f32 %v1380_v14, %v284_v42 }
 0x118   :  { %v1383_v16 = vpop.f32.mrb[3].mxu1 }
 0x135   :  { %v1892_v17 = vpop.f32.mrb[4].mxu1 }
 0x136   :  { %v1893_v18 = vpop.f32.mrb[5].mxu1 }
 0x137   :  { %v1894_v7 = vadd.f32 %v1893_v18, %v1892_v17  ;;  %v1895_v19 = vpop.f32.mrb[6].mxu1 }
 0x138   :  { %v1896_v20 = vpop.f32.mrb[7].mxu1 }
 0x139   :  { %v1543_v28 = vadd.f32 %v1894_v7, %v288_v25 }
 0x155   :  { %v1914_v26 = vpop.f32.mrb[8].mxu1 }
 0x156   :  { %v1915_v27 = vpop.f32.mrb[9].mxu1 }
 0x157   :  { %v1916_v29 = vadd.f32 %v1915_v27, %v1914_v26  ;;  %v1917_v30 = vpop.f32.mrb[10].mxu1 }
 0x158   :  { %v1918_v31 = vpop.f32.mrb[11].mxu1 }
 0x159   :  { %v1583_v32 = vadd.f32 %v1916_v29, %v1543_v28 }
 0x175   :  { %v1936_v33 = vpop.f32.mrb[12].mxu1 }
 0x176   :  { %v1937_v34 = vpop.f32.mrb[13].mxu1 }
 0x177   :  { %v1938_v35 = vadd.f32 %v1937_v34, %v1936_v33  ;;  %v1939_v36 = vpop.f32.mrb[14].mxu1 }
 0x178   :  { %v1940_v37 = vpop.f32.mrb[15].mxu1 }
 0x179   :  { %v1623_v38 = vadd.f32 %v1938_v35, %v1583_v32 }
 0x195   :  { %v1958_v46 = vpop.f32.mrb[16].mxu1 }
 0x196   :  { %v1501_v45 = vpop.f32.mrb[0].mxu0  ;;  %v1959_v49 = vpop.f32.mrb[17].mxu1 }
 0x197   :  { %v1965_v47 = vadd.f32 %v1501_v45, %v1379_v43  ;;  %v1503_v48 = vpop.f32.mrb[1].mxu0  ;;  %v1960_v51 = vadd.f32 %v1959_v49, %v1958_v46  ;;  %v1961_v52 = vpop.f32.mrb[18].mxu1 }
 0x198   :  { %v1967_v50 = vadd.f32 %v1503_v48, %v1381_v44  ;;  %v1505_v53 = vpop.f32.mrb[2].mxu0  ;;  %v1962_v55 = vpop.f32.mrb[19].mxu1 }
 0x199   :  { %v1506_v54 = vpop.f32.mrb[3].mxu0  ;;  %v1663_v57 = vadd.f32 %v1960_v51, %v1623_v38 }
 0x19a   :  { %v1668_v56 = vadd.f32 %v1967_v50, %v1965_v47 }
 0x19c   :  { %v1669_v58 = vadd.f32 %v1668_v56, %v1663_v57 }
 0x19e   :  { %v1670_v59 = vmul.f32 0.33333334, %v1669_v58 }
 0x1a0   :  { %1671 = vst [vmem:[%s2893_s3] sm:$0xff] %v1670_v59 }

</bundles_post_ra>
